<compile_context>
chip_gen: v7x
topology: tpu7x:2x2x1
jax: 0.10.0
libtpu: 0.0.40
codegen_flags: <defaults>
</compile_context>

<pallas_src>
import functools

import jax
import jax.numpy as jnp
from jax import lax
from jax.experimental import pallas as pl
from jax.experimental.pallas import tpu as pltpu


def _round_up(x, m):
    return (x + m - 1) // m * m


def _pad2(a, rows, cols):
    r, c = a.shape
    if r == rows and c == cols:
        return a
    return jnp.pad(a, ((0, rows - r), (0, cols - c)))


def _choose_tiles(B, I, O, tm, tn, tk):
    tm = min(tm, _round_up(B, 8))
    tn = min(tn, _round_up(O, 128))
    tk = min(tk, _round_up(I, 128))
    return tm, tn, tk, _round_up(B, tm), _round_up(I, tk), _round_up(O, tn)


def _accumulate(x_tile, w_eff, acc_ref, matmul_dtype):
    if matmul_dtype is not None:
        x_tile = x_tile.astype(matmul_dtype)
        w_eff = w_eff.astype(matmul_dtype)
    # Contract the last (lane) dim of both operands: (tM,tK) . (tN,tK) -> (tM,tN).
    # No transpose of w_eff is ever materialized.
    acc_ref[...] += lax.dot_general(
        x_tile, w_eff,
        dimension_numbers=(((1,), (1,)), ((), ())),
        preferred_element_type=jnp.float32)


def _finalize(acc_ref, bmu_ref, bsig_ref, beps_ref, o_ref):
    b_eff = bmu_ref[...] + bsig_ref[...] * beps_ref[...]          # (1, tN)
    o_ref[...] = (acc_ref[...] + b_eff).astype(o_ref.dtype)


def _dense_kernel(x_ref, wmu_ref, wsig_ref, weps_ref,
                  bmu_ref, bsig_ref, beps_ref, o_ref, acc_ref, *, matmul_dtype):
    k = pl.program_id(2)

    @pl.when(k == 0)
    def _():
        acc_ref[...] = jnp.zeros_like(acc_ref)

    w_eff = wmu_ref[...] + wsig_ref[...] * weps_ref[...]          # (tN, tK) f32
    _accumulate(x_ref[...], w_eff, acc_ref, matmul_dtype)

    @pl.when(k == pl.num_programs(2) - 1)
    def _():
        _finalize(acc_ref, bmu_ref, bsig_ref, beps_ref, o_ref)


def _factored_kernel(x_ref, wmu_ref, wsig_ref, epso_ref, epsi_ref,
                     bmu_ref, bsig_ref, beps_ref, o_ref, acc_ref, *, matmul_dtype):
    k = pl.program_id(2)

    @pl.when(k == 0)
    def _():
        acc_ref[...] = jnp.zeros_like(acc_ref)

    # Rank-1 w_epsilon tile rebuilt in-register: (tN,1) * (1,tK) -> (tN,tK).
    w_eps = epso_ref[...] * epsi_ref[...]
    w_eff = wmu_ref[...] + wsig_ref[...] * w_eps                  # (tN, tK) f32
    _accumulate(x_ref[...], w_eff, acc_ref, matmul_dtype)

    @pl.when(k == pl.num_programs(2) - 1)
    def _():
        _finalize(acc_ref, bmu_ref, bsig_ref, beps_ref, o_ref)


def _pallas_linear(kernel, xp, weights, weight_specs, biases,
                   tm, tn, tk, Bp, Ip, Op, out_dtype, matmul_dtype):
    grid = (Bp // tm, Op // tn, Ip // tk)
    x_spec = pl.BlockSpec((tm, tk), lambda i, j, k: (i, k))
    # Bias blocks index only on j -> DMA'd once per output column tile,
    # not once per K step.
    b_spec = pl.BlockSpec((1, tn), lambda i, j, k: (0, j))
    out_spec = pl.BlockSpec((tm, tn), lambda i, j, k: (i, j))

    grid_spec = pltpu.PrefetchScalarGridSpec(
        num_scalar_prefetch=0,
        grid=grid,
        in_specs=[x_spec, *weight_specs, b_spec, b_spec, b_spec],
        out_specs=out_spec,
        scratch_shapes=[pltpu.VMEM((tm, tn), jnp.float32)],
    )
    return pl.pallas_call(
        functools.partial(kernel, matmul_dtype=matmul_dtype),
        out_shape=jax.ShapeDtypeStruct((Bp, Op), out_dtype),
        grid_spec=grid_spec,
        compiler_params=pltpu.CompilerParams(
            dimension_semantics=("parallel", "parallel", "arbitrary")),
    )(xp, *weights, *biases)


def noisy_linear(x, w_mu, w_sigma, w_eps, b_mu, b_sigma, b_eps,
                 *, tm=128, tn=256, tk=256, matmul_dtype=None):
    """General path: full (O, I) w_epsilon buffer — exact F.linear semantics."""
    B, I = x.shape
    O = w_mu.shape[0]
    tm, tn, tk, Bp, Ip, Op = _choose_tiles(B, I, O, tm, tn, tk)

    xp = _pad2(x, Bp, Ip)
    w_spec = pl.BlockSpec((tn, tk), lambda i, j, k: (j, k))
    weights = [_pad2(w_mu, Op, Ip), _pad2(w_sigma, Op, Ip), _pad2(w_eps, Op, Ip)]
    biases = [_pad2(b.reshape(1, O), 1, Op) for b in (b_mu, b_sigma, b_eps)]

    out = _pallas_linear(_dense_kernel, xp, weights, [w_spec] * 3, biases,
                         tm, tn, tk, Bp, Ip, Op, x.dtype, matmul_dtype)
    return out[:B, :O]


def noisy_linear_factored(x, w_mu, w_sigma, eps_out, eps_in, b_mu, b_sigma, b_eps,
                          *, tm=128, tn=256, tk=256, matmul_dtype=None):
    """Optimized path: w_epsilon = outer(eps_out, eps_in) is rebuilt in-kernel."""
    B, I = x.shape
    O = w_mu.shape[0]
    tm, tn, tk, Bp, Ip, Op = _choose_tiles(B, I, O, tm, tn, tk)

    xp = _pad2(x, Bp, Ip)
    w_spec = pl.BlockSpec((tn, tk), lambda i, j, k: (j, k))
    epso_spec = pl.BlockSpec((tn, 1), lambda i, j, k: (j, 0))
    epsi_spec = pl.BlockSpec((1, tk), lambda i, j, k: (0, k))
    weights = [_pad2(w_mu, Op, Ip),
               _pad2(w_sigma, Op, Ip),
               _pad2(eps_out.reshape(O, 1), Op, 1),
               _pad2(eps_in.reshape(1, I), 1, Ip)]
    weight_specs = [w_spec, w_spec, epso_spec, epsi_spec]
    biases = [_pad2(b.reshape(1, O), 1, Op) for b in (b_mu, b_sigma, b_eps)]

    out = _pallas_linear(_factored_kernel, xp, weights, weight_specs, biases,
                         tm, tn, tk, Bp, Ip, Op, x.dtype, matmul_dtype)
    return out[:B, :O]


def _f(v):
    # sign(x) * sqrt(|x|) -- the factored-noise transform from the module.
    return jnp.sign(v) * jnp.sqrt(jnp.abs(v))


def init_noisy_linear_params(key, in_features, out_features, sigma0):
    c = in_features ** (-0.5)
    k_wmu, k_bmu, k_eo, k_ei = jax.random.split(key, 4)
    w_mu = jax.random.uniform(k_wmu, (out_features, in_features),
                              jnp.float32, minval=-c, maxval=c)
    w_sigma = jnp.full((out_features, in_features), sigma0 * c, jnp.float32)
    b_mu = jax.random.uniform(k_bmu, (out_features,),
                              jnp.float32, minval=-c, maxval=c)
    b_sigma = jnp.full((out_features,), sigma0 * c, jnp.float32)
    # resample_noise(): factored Gaussian noise (eps_out == b_epsilon).
    eps_out = _f(jax.random.normal(k_eo, (out_features,), jnp.float32))
    eps_in = _f(jax.random.normal(k_ei, (in_features,), jnp.float32))
    return w_mu, w_sigma, b_mu, b_sigma, eps_out, eps_in


def _reference(x, w_mu, w_sigma, w_eps, b_mu, b_sigma, b_eps):
    return x @ (w_mu + w_sigma * w_eps).T + (b_mu + b_sigma * b_eps)


if __name__ == "__main__":
    key = jax.random.PRNGKey(0)
    k_param, k_x, k_eps2, k_x2, k_p2 = jax.random.split(key, 5)

    # Small but lane/MXU-friendly demo shapes (B mult of 8, I/O mults of 128).
    batch, in_features, out_features = 8, 128, 256
    sigma0 = 0.5

    (w_mu, w_sigma, b_mu, b_sigma, eps_out, eps_in) = init_noisy_linear_params(
        k_param, in_features, out_features, sigma0)
    b_eps = eps_out                      # module: b_epsilon
    w_eps = jnp.outer(eps_out, eps_in)   # module: w_epsilon (rank-1)

    x = jax.random.normal(k_x, (batch, in_features), jnp.float32)
    ref = _reference(x, w_mu, w_sigma, w_eps, b_mu, b_sigma, b_eps)

    # 1) Optimized factored-noise kernel (f32 MXU inputs).
    out = jax.block_until_ready(
        noisy_linear_factored(x, w_mu, w_sigma, eps_out, eps_in,
                              b_mu, b_sigma, b_eps))
    assert out.shape == (batch, out_features)
    assert jnp.allclose(out, ref, atol=1e-4, rtol=1e-4)

    # 2) General dense-epsilon kernel (exact module forward semantics).
    out_dense = jax.block_until_ready(
        noisy_linear(x, w_mu, w_sigma, w_eps, b_mu, b_sigma, b_eps))
    assert jnp.allclose(out_dense, ref, atol=1e-4, rtol=1e-4)

    # 3) bf16 MXU inputs / f32 accumulation (v6e/v7x fast path) — loose tolerance.
    out_bf16 = jax.block_until_ready(
        noisy_linear_factored(x, w_mu, w_sigma, eps_out, eps_in,
                              b_mu, b_sigma, b_eps, matmul_dtype=jnp.bfloat16))
    assert jnp.allclose(out_bf16, ref, atol=6e-2, rtol=6e-2)

    # 4) Unaligned shapes exercise the wrapper-side padding (dense path).
    b2, i2, o2 = 5, 96, 200
    wm2 = jax.random.normal(k_p2, (o2, i2), jnp.float32) * (i2 ** -0.5)
    ws2 = jnp.full((o2, i2), sigma0 * (i2 ** -0.5), jnp.float32)
    we2 = jax.random.normal(k_eps2, (o2, i2), jnp.float32)
    bm2 = jnp.zeros((o2,), jnp.float32)
    bs2 = jnp.full((o2,), sigma0 * (i2 ** -0.5), jnp.float32)
    be2 = jnp.ones((o2,), jnp.float32)
    x2 = jax.random.normal(k_x2, (b2, i2), jnp.float32)
    ref2 = _reference(x2, wm2, ws2, we2, bm2, bs2, be2)
    out2 = jax.block_until_ready(noisy_linear(x2, wm2, ws2, we2, bm2, bs2, be2))
    assert out2.shape == (b2, o2)
    assert jnp.allclose(out2, ref2, atol=1e-4, rtol=1e-4)

    # 5) Zero-noise mode (module.zero_noise()) degenerates to a plain linear.
    zo = jnp.zeros_like(eps_out)
    zi = jnp.zeros_like(eps_in)
    ref_zero = x @ w_mu.T + b_mu
    out_zero = jax.block_until_ready(
        noisy_linear_factored(x, w_mu, w_sigma, zo, zi, b_mu, b_sigma, zo))
    assert jnp.allclose(out_zero, ref_zero, atol=1e-4, rtol=1e-4)

    print("KERNEL_OK")
</pallas_src>

<mosaic_0001>
module attributes {stable_mosaic.version = 11 : i64} {
  func.func @_factored_kernel(%arg0: i32, %arg1: i32, %arg2: i32, %arg3: memref<8x128xf32, #tpu.memory_space<vmem>>, %arg4: memref<256x128xf32, #tpu.memory_space<vmem>>, %arg5: memref<256x128xf32, #tpu.memory_space<vmem>>, %arg6: memref<256x1xf32, #tpu.memory_space<vmem>>, %arg7: memref<1x128xf32, #tpu.memory_space<vmem>>, %arg8: memref<1x256xf32, #tpu.memory_space<vmem>>, %arg9: memref<1x256xf32, #tpu.memory_space<vmem>>, %arg10: memref<1x256xf32, #tpu.memory_space<vmem>>, %arg11: memref<8x256xf32, #tpu.memory_space<vmem>>, %arg12: memref<8x256xf32, #tpu.memory_space<vmem>>) attributes {dimension_semantics = [#tpu.dimension_semantics<parallel>, #tpu.dimension_semantics<parallel>, #tpu.dimension_semantics<arbitrary>], iteration_bounds = array<i64: 1, 1, 1>, scalar_prefetch = 0 : i64, scratch_operands = 1 : i64, tpu.core_type = #tpu.core_type<tc>, window_params = [{transform_indices = @transform_0, window_bounds = array<i64: 8, 128>}, {transform_indices = @transform_1, window_bounds = array<i64: 256, 128>}, {transform_indices = @transform_2, window_bounds = array<i64: 256, 128>}, {transform_indices = @transform_3, window_bounds = array<i64: 256, 1>}, {transform_indices = @transform_4, window_bounds = array<i64: 1, 128>}, {transform_indices = @transform_5, window_bounds = array<i64: 1, 256>}, {transform_indices = @transform_6, window_bounds = array<i64: 1, 256>}, {transform_indices = @transform_7, window_bounds = array<i64: 1, 256>}, {transform_indices = @transform_8, window_bounds = array<i64: 8, 256>}]} {
    %c0_i32 = arith.constant 0 : i32
    %0 = arith.cmpi eq, %arg2, %c0_i32 : i32
    %1 = arith.extui %0 : i1 to i32
    %c0_i32_0 = arith.constant 0 : i32
    %2 = arith.cmpi ne, %1, %c0_i32_0 : i32
    scf.if %2 {
      %cst_16 = arith.constant 0.000000e+00 : f32
      %20 = vector.broadcast %cst_16 : f32 to vector<8x256xf32>
      %c0_17 = arith.constant 0 : index
      %c0_18 = arith.constant 0 : index
      %21 = vector.load %arg12[%c0_17, %c0_18] : memref<8x256xf32, #tpu.memory_space<vmem>>, vector<8x256xf32>
      tpu.vector_store %arg12[%c0_17, %c0_18], %20 {strides = array<i32>} : memref<8x256xf32, #tpu.memory_space<vmem>>, vector<8x256xf32>,
    } else {
    }
    %c0 = arith.constant 0 : index
    %c0_1 = arith.constant 0 : index
    %3 = vector.load %arg6[%c0, %c0_1] : memref<256x1xf32, #tpu.memory_space<vmem>>, vector<256x1xf32>
    %c0_2 = arith.constant 0 : index
    %c0_3 = arith.constant 0 : index
    %4 = vector.load %arg7[%c0_2, %c0_3] : memref<1x128xf32, #tpu.memory_space<vmem>>, vector<1x128xf32>
    %5 = vector.broadcast %3 : vector<256x1xf32> to vector<256x128xf32>
    %6 = vector.broadcast %4 : vector<1x128xf32> to vector<256x128xf32>
    %7 = arith.mulf %5, %6 : vector<256x128xf32>
    %c0_4 = arith.constant 0 : index
    %c0_5 = arith.constant 0 : index
    %8 = vector.load %arg4[%c0_4, %c0_5] : memref<256x128xf32, #tpu.memory_space<vmem>>, vector<256x128xf32>
    %c0_6 = arith.constant 0 : index
    %c0_7 = arith.constant 0 : index
    %9 = vector.load %arg5[%c0_6, %c0_7] : memref<256x128xf32, #tpu.memory_space<vmem>>, vector<256x128xf32>
    %10 = arith.mulf %9, %7 : vector<256x128xf32>
    %11 = arith.addf %8, %10 : vector<256x128xf32>
    %c0_8 = arith.constant 0 : index
    %c0_9 = arith.constant 0 : index
    %12 = vector.load %arg3[%c0_8, %c0_9] : memref<8x128xf32, #tpu.memory_space<vmem>>, vector<8x128xf32>
    %c0_10 = arith.constant 0 : index
    %c0_11 = arith.constant 0 : index
    %13 = vector.load %arg12[%c0_10, %c0_11] : memref<8x256xf32, #tpu.memory_space<vmem>>, vector<8x256xf32>
    %cst = arith.constant dense<0.000000e+00> : vector<8x256xf32>
    %14 = tpu.matmul %12, %11, %cst {dimension_numbers = #tpu.dot_dimension_numbers<[1], [1], [0], [0], [0, 0, 1, 0], [], []>} : vector<8x128xf32>, vector<256x128xf32>, vector<8x256xf32> -> vector<8x256xf32>
    %15 = arith.addf %13, %14 : vector<8x256xf32>
    %c0_12 = arith.constant 0 : index
    %c0_13 = arith.constant 0 : index
    %16 = vector.load %arg12[%c0_12, %c0_13] : memref<8x256xf32, #tpu.memory_space<vmem>>, vector<8x256xf32>
    tpu.vector_store %arg12[%c0_12, %c0_13], %15 {strides = array<i32>} : memref<8x256xf32, #tpu.memory_space<vmem>>, vector<8x256xf32>,
    %c0_i32_14 = arith.constant 0 : i32
    %17 = arith.cmpi eq, %arg2, %c0_i32_14 : i32
    %18 = arith.extui %17 : i1 to i32
    %c0_i32_15 = arith.constant 0 : i32
    %19 = arith.cmpi ne, %18, %c0_i32_15 : i32
    scf.if %19 {
      %c0_16 = arith.constant 0 : index
      %c0_17 = arith.constant 0 : index
      %20 = vector.load %arg8[%c0_16, %c0_17] : memref<1x256xf32, #tpu.memory_space<vmem>>, vector<1x256xf32>
      %c0_18 = arith.constant 0 : index
      %c0_19 = arith.constant 0 : index
      %21 = vector.load %arg9[%c0_18, %c0_19] : memref<1x256xf32, #tpu.memory_space<vmem>>, vector<1x256xf32>
      %c0_20 = arith.constant 0 : index
      %c0_21 = arith.constant 0 : index
      %22 = vector.load %arg10[%c0_20, %c0_21] : memref<1x256xf32, #tpu.memory_space<vmem>>, vector<1x256xf32>
      %23 = arith.mulf %21, %22 : vector<1x256xf32>
      %24 = arith.addf %20, %23 : vector<1x256xf32>
      %c0_22 = arith.constant 0 : index
      %c0_23 = arith.constant 0 : index
      %25 = vector.load %arg12[%c0_22, %c0_23] : memref<8x256xf32, #tpu.memory_space<vmem>>, vector<8x256xf32>
      %26 = vector.broadcast %24 : vector<1x256xf32> to vector<8x256xf32>
      %27 = arith.addf %25, %26 : vector<8x256xf32>
      %c0_24 = arith.constant 0 : index
      %c0_25 = arith.constant 0 : index
      %28 = vector.load %arg11[%c0_24, %c0_25] : memref<8x256xf32, #tpu.memory_space<vmem>>, vector<8x256xf32>
      tpu.vector_store %arg11[%c0_24, %c0_25], %27 {strides = array<i32>} : memref<8x256xf32, #tpu.memory_space<vmem>>, vector<8x256xf32>,
    } else {
    }
    return
  }
  func.func @transform_0(%arg0: i32, %arg1: i32, %arg2: i32) -> (i32, i32) {
    %c0_i32 = arith.constant 0 : i32
    return %arg0, %arg2 : i32, i32
  }
  func.func @transform_1(%arg0: i32, %arg1: i32, %arg2: i32) -> (i32, i32) {
    %c0_i32 = arith.constant 0 : i32
    return %arg1, %arg2 : i32, i32
  }
  func.func @transform_2(%arg0: i32, %arg1: i32, %arg2: i32) -> (i32, i32) {
    %c0_i32 = arith.constant 0 : i32
    return %arg1, %arg2 : i32, i32
  }
  func.func @transform_3(%arg0: i32, %arg1: i32, %arg2: i32) -> (i32, i32) {
    %c0_i32 = arith.constant 0 : i32
    %c0_i32_0 = arith.constant 0 : i32
    return %arg1, %c0_i32 : i32, i32
  }
  func.func @transform_4(%arg0: i32, %arg1: i32, %arg2: i32) -> (i32, i32) {
    %c0_i32 = arith.constant 0 : i32
    %c0_i32_0 = arith.constant 0 : i32
    return %c0_i32, %arg2 : i32, i32
  }
  func.func @transform_5(%arg0: i32, %arg1: i32, %arg2: i32) -> (i32, i32) {
    %c0_i32 = arith.constant 0 : i32
    %c0_i32_0 = arith.constant 0 : i32
    return %c0_i32, %arg1 : i32, i32
  }
  func.func @transform_6(%arg0: i32, %arg1: i32, %arg2: i32) -> (i32, i32) {
    %c0_i32 = arith.constant 0 : i32
    %c0_i32_0 = arith.constant 0 : i32
    return %c0_i32, %arg1 : i32, i32
  }
  func.func @transform_7(%arg0: i32, %arg1: i32, %arg2: i32) -> (i32, i32) {
    %c0_i32 = arith.constant 0 : i32
    %c0_i32_0 = arith.constant 0 : i32
    return %c0_i32, %arg1 : i32, i32
  }
  func.func @transform_8(%arg0: i32, %arg1: i32, %arg2: i32) -> (i32, i32) {
    %c0_i32 = arith.constant 0 : i32
    return %arg0, %arg1 : i32, i32
  }
}

</mosaic_0001>

<bundles_post_ra>
// kernel: tpu_custom_call.1
= control target key start
LH: loop header
LB: loop body
LE: loop exit
PB: predicated region body
PF: predicated region fallthrough
CT: control target
= control target key end

     0   :  { %13 = vsyncpa [#allocation4], 0  ;;  %s1023_s0 = inlined_call_operand.hbm [shape: f32[8,128], index: 0, kind: input, shape index: {}]   ;;  %s1024_s1 = inlined_call_operand.vmem [shape: f32[256,128], index: 1, kind: input, shape index: {}]   ;;  %s1025_s2 = inlined_call_operand.hbm [shape: f32[256,128], index: 2, kind: input, shape index: {}]   ;;  %s1026_s3 = inlined_call_operand.vmem [shape: f32[256,1], index: 3, kind: input, shape index: {}]   ;;  %s1027_s4 = inlined_call_operand.vmem [shape: f32[1,128], index: 4, kind: input, shape index: {}]   ;;  %s1028_s5 = inlined_call_operand.vmem [shape: f32[1,256], index: 5, kind: input, shape index: {}]   ;;  %s1029_s6 = inlined_call_operand.vmem [shape: f32[1,256], index: 6, kind: input, shape index: {}]   ;;  %s1030_s7 = inlined_call_operand.vmem [shape: f32[1,256], index: 7, kind: input, shape index: {}]   ;;  %s1031_s8 = inlined_call_operand.hbm [shape: f32[8,256], index: 8, kind: output, shape index: {}]  }
   0x1   :  { %14 = vsyncpa [#allocation7], 0 }
   0x2   :  { %15 = vsyncpa [#allocation5], 0  ;;  %s687_s27 = smov [#allocation3]   ;;  %s688_s29 = smov [#allocation6]  }
   0x3   :  { %s22_s28 = sshll.u32 %s687_s27, 4  ;;  %s33_s30 = sshll.u32 %s688_s29, 4  ;;  %s23_s28 = int_to_ptr.vmem [resolvable:$true] %s22_s28  ;;  %s738_s30 = int_to_ptr.vmem [resolvable:$true] %s33_s30 }
   0x4   :  { %s615_s11 = scalar_lea.hbm %s1023_s0, 128 }
   0x5   :  { %p616_p0 = scmp.ne.s32.totalorder %s1023_s0, %s615_s11  ;;  %p619_p1 = scmp.lt.u32.totalorder %s615_s11, %s1023_s0 }
   0x7   :  { %p621_p2 = pnand %p619_p1, %p616_p0 }
   0x9   :  { %624 = shalt.err (!%p621_p2)
}
   0xa   :  { %s625_s16 = scalar_lea.vmem %s23_s28, 128  ;;  %p630_p4 = scmp.lt.s32.totalorder %s23_s28, %s23_s28 }
   0xb   :  { %p626_p3 = scmp.ne.s32.totalorder %s23_s28, %s625_s16  ;;  %p631_p5 = scmp.lt.s32.totalorder %s625_s16, %s625_s16 }
   0xd   :  { %p632_p6 = por %p631_p5, %p630_p4 }
   0xf   :  { %p633_p7 = pnand %p632_p6, %p626_p3 }
  0x11   :  { %636 = shalt.err (!%p633_p7)
}
  0x12   :  { %25 = dma.hbm_to_vmem [thread:$0]  %s1023_s0, 128, %s23_s28, [#allocation4]  }
  0x13   :  { %s637_s21 = scalar_lea.hbm %s1025_s2, 4096 }
  0x14   :  { %p638_p8 = scmp.ne.s32.totalorder %s1025_s2, %s637_s21  ;;  %p641_p9 = scmp.lt.u32.totalorder %s637_s21, %s1025_s2 }
  0x16   :  { %p643_p10 = pnand %p641_p9, %p638_p8 }
  0x18   :  { %646 = shalt.err (!%p643_p10)
}
  0x19   :  { %s647_s26 = scalar_lea.vmem %s738_s30, 4096  ;;  %p652_p12 = scmp.lt.s32.totalorder %s738_s30, %s738_s30 }
  0x1a   :  { %p648_p11 = scmp.ne.s32.totalorder %s738_s30, %s647_s26  ;;  %p653_p13 = scmp.lt.s32.totalorder %s647_s26, %s647_s26 }
  0x1c   :  { %p654_p0 = por %p653_p13, %p652_p12 }
  0x1e   :  { %p655_p1 = pnand %p654_p0, %p648_p11 }
  0x20   :  { %658 = shalt.err (!%p655_p1)
}
  0x21   :  { %s689_s0 = smov 128   ;;  %s690_s27 = smov 8  }
  0x22   :  { %39 = dma.hbm_to_vmem [thread:$0]  %s1025_s2, 4096, %s738_s30, [#allocation7], %s689_s0, %s689_s0, %s690_s27  }
  0x23   :  { %681 = dma.done.wait [#allocation4], 128  }
  0x24   :  { %682 = vsyncadd [#allocation4], 4294967168 }
  0x25   :  { %683 = dma.done.wait [#allocation7], 4096  }
  0x26   :  { %684 = vsyncadd [#allocation7], 4294963200  ;;  %v691_v0 = vmov 0   ;;  %v78_v1 = vld [vmem:[%s1026_s3 + $0x80] sm:$0xff]  ;;  %v79_v3 = vld [vmem:[%s1026_s3 + $0x88] sm:$0xff]  ;;  %s692_s16 = smov [#allocation8]  }
  0x27   :  { %614 = vset.pattern.permute.xlu1 %v691_v0  ;;  %613 = vset.pattern.permute.xlu0 %v691_v0  ;;  %v62_v2 = vld [vmem:[%s1026_s3] sm:$0xff]  ;;  %v63_v4 = vld [vmem:[%s1026_s3 + $0x8] sm:$0xff]  ;;  %v80_v5 = vld [vmem:[%s1026_s3 + $0x90] sm:$0xff]  ;;  %s530_s17 = sshll.u32 %s692_s16, 4  ;;  %s531_s17 = int_to_ptr.vmem [resolvable:$true] %s530_s17 }
  0x28   :  { %177 = vperm.xlu0 %613, %v78_v1   ;;  %97 = vperm.xlu1 %614, %v62_v2   ;;  %v81_v6 = vld [vmem:[%s1026_s3 + $0x98] sm:$0xff]  ;;  %v64_v7 = vld [vmem:[%s1026_s3 + $0x10] sm:$0xff]  ;;  %v82_v9 = vld [vmem:[%s1026_s3 + $0xa0] sm:$0xff]  ;;  %p664_p3 = scmp.lt.s32.totalorder %s531_s17, %s531_s17 }
  0x29   :  { %v65_v8 = vld [vmem:[%s1026_s3 + $0x18] sm:$0xff]  ;;  %v83_v10 = vld [vmem:[%s1026_s3 + $0xa8] sm:$0xff]  ;;  %v66_v11 = vld [vmem:[%s1026_s3 + $0x20] sm:$0xff] }
  0x2a   :  { %v67_v12 = vld [vmem:[%s1026_s3 + $0x28] sm:$0xff]  ;;  %v84_v13 = vld [vmem:[%s1026_s3 + $0xb0] sm:$0xff]  ;;  %v85_v14 = vld [vmem:[%s1026_s3 + $0xb8] sm:$0xff] }
  0x2b   :  { %v68_v15 = vld [vmem:[%s1026_s3 + $0x30] sm:$0xff]  ;;  %v69_v16 = vld [vmem:[%s1026_s3 + $0x38] sm:$0xff]  ;;  %v86_v17 = vld [vmem:[%s1026_s3 + $0xc0] sm:$0xff] }
  0x2c   :  { %182 = vperm.xlu0 %613, %v79_v3   ;;  %102 = vperm.xlu1 %614, %v63_v4   ;;  %v87_v18 = vld [vmem:[%s1026_s3 + $0xc8] sm:$0xff]  ;;  %v70_v19 = vld [vmem:[%s1026_s3 + $0x40] sm:$0xff]  ;;  %v88_v21 = vld [vmem:[%s1026_s3 + $0xd0] sm:$0xff] }
  0x2d   :  { %v71_v20 = vld [vmem:[%s1026_s3 + $0x48] sm:$0xff]  ;;  %v89_v22 = vld [vmem:[%s1026_s3 + $0xd8] sm:$0xff]  ;;  %v72_v23 = vld [vmem:[%s1026_s3 + $0x50] sm:$0xff] }
  0x2e   :  { %v73_v24 = vld [vmem:[%s1026_s3 + $0x58] sm:$0xff]  ;;  %v90_v25 = vld [vmem:[%s1026_s3 + $0xe0] sm:$0xff]  ;;  %v91_v26 = vld [vmem:[%s1026_s3 + $0xe8] sm:$0xff] }
  0x2f   :  { %v74_v27 = vld [vmem:[%s1026_s3 + $0x60] sm:$0xff]  ;;  %v75_v28 = vld [vmem:[%s1026_s3 + $0x68] sm:$0xff]  ;;  %v92_v29 = vld [vmem:[%s1026_s3 + $0xf0] sm:$0xff] }
  0x30   :  { %187 = vperm.xlu0 %613, %v80_v5   ;;  %192 = vperm.xlu1 %614, %v81_v6   ;;  %v93_v30 = vld [vmem:[%s1026_s3 + $0xf8] sm:$0xff]  ;;  %v76_v31 = vld [vmem:[%s1026_s3 + $0x70] sm:$0xff]  ;;  %v865_v33 = vld [vmem:[#allocation3] sm:$0xff] }
  0x31   :  { %v77_v32 = vld [vmem:[%s1026_s3 + $0x78] sm:$0xff]  ;;  %573 = vmatprep.mubr.f32.mxu0 %v865_v33  ;;  %v871_v34 = vld [vmem:[%s1027_s4] ss:$0 sm:$0xff]  ;;  %v341_v37 = vld [vmem:[#allocation6 + $0x80] sm:$0xff] }
  0x32   :  { %v325_v39 = vld [vmem:[#allocation6] sm:$0xff]  ;;  %v342_v43 = vld [vmem:[#allocation6 + $0x88] sm:$0xff]  ;;  %v309_v49 = vld [vmem:[%s1024_s1 + $0x80] sm:$0xff] }
  0x33   :  { %v326_v45 = vld [vmem:[#allocation6 + $0x8] sm:$0xff]  ;;  %v293_v50 = vld [vmem:[%s1024_s1] sm:$0xff]  ;;  %v310_v51 = vld [vmem:[%s1024_s1 + $0x88] sm:$0xff] }
  0x34   :  { %107 = vperm.xlu0 %613, %v64_v7   ;;  %112 = vperm.xlu1 %614, %v65_v8   ;;  %v294_v52 = vld [vmem:[%s1024_s1 + $0x8] sm:$0xff]  ;;  %v343_v55 = vld [vmem:[#allocation6 + $0x90] sm:$0xff]  ;;  %v344_v57 = vld [vmem:[#allocation6 + $0x98] sm:$0xff] }
  0x35   :  { %v311_v1 = vld [vmem:[%s1024_s1 + $0x90] sm:$0xff]  ;;  %v312_v2 = vld [vmem:[%s1024_s1 + $0x98] sm:$0xff] }
  0x36   :  { %v327_v7 = vld [vmem:[#allocation6 + $0x10] sm:$0xff] }
  0x38   :  { %197 = vperm.xlu0 %613, %v82_v9   ;;  %202 = vperm.xlu1 %614, %v83_v10   ;;  %v328_v9 = vld [vmem:[#allocation6 + $0x18] sm:$0xff] }
  0x3c   :  { %117 = vperm.xlu0 %613, %v66_v11   ;;  %122 = vperm.xlu1 %614, %v67_v12  }
  0x40   :  { %207 = vperm.xlu0 %613, %v84_v13   ;;  %212 = vperm.xlu1 %614, %v85_v14  }
  0x44   :  { %127 = vperm.xlu0 %613, %v68_v15   ;;  %132 = vperm.xlu1 %614, %v69_v16   ;;  %v295_v15 = vld [vmem:[%s1024_s1 + $0x10] sm:$0xff]  ;;  %v296_v16 = vld [vmem:[%s1024_s1 + $0x18] sm:$0xff] }
  0x48   :  { %217 = vperm.xlu0 %613, %v86_v17   ;;  %222 = vperm.xlu1 %614, %v87_v18  }
  0x4c   :  { %137 = vperm.xlu0 %613, %v70_v19   ;;  %142 = vperm.xlu1 %614, %v71_v20   ;;  %v345_v20 = vld [vmem:[#allocation6 + $0xa0] sm:$0xff] }
  0x50   :  { %227 = vperm.xlu0 %613, %v88_v21   ;;  %232 = vperm.xlu1 %614, %v89_v22   ;;  %v346_v22 = vld [vmem:[#allocation6 + $0xa8] sm:$0xff] }
  0x54   :  { %147 = vperm.xlu0 %613, %v72_v23   ;;  %152 = vperm.xlu1 %614, %v73_v24  }
  0x58   :  { %237 = vperm.xlu0 %613, %v90_v25   ;;  %242 = vperm.xlu1 %614, %v91_v26  }
  0x5c   :  { %157 = vperm.xlu0 %613, %v74_v27   ;;  %162 = vperm.xlu1 %614, %v75_v28   ;;  %v313_v28 = vld [vmem:[%s1024_s1 + $0xa0] sm:$0xff] }
  0x60   :  { %247 = vperm.xlu0 %613, %v92_v29   ;;  %252 = vperm.xlu1 %614, %v93_v30   ;;  %v314_v29 = vld [vmem:[%s1024_s1 + $0xa8] sm:$0xff] }
  0x64   :  { %167 = vperm.xlu0 %613, %v76_v31   ;;  %172 = vperm.xlu1 %614, %v77_v32  }
  0xa7   :  { %v178_v35 = vpop.permute.xlu0 %177  ;;  %v98_v36 = vpop.permute.xlu1 %97 }
  0xa8   :  { %v277_v38 = vmul.f32 %v871_v34, %v178_v35  ;;  %v261_v40 = vmul.f32 %v871_v34, %v98_v36  ;;  %v329_v35 = vld [vmem:[#allocation6 + $0x20] sm:$0xff] }
  0xaa   :  { %v373_v41 = vmul.f32 %v341_v37, %v277_v38  ;;  %v357_v42 = vmul.f32 %v325_v39, %v261_v40  ;;  %v330_v37 = vld [vmem:[#allocation6 + $0x28] sm:$0xff] }
  0xab   :  { %v183_v44 = vpop.permute.xlu0 %182  ;;  %v103_v46 = vpop.permute.xlu1 %102 }
  0xac   :  { %v278_v47 = vmul.f32 %v871_v34, %v183_v44  ;;  %v262_v48 = vmul.f32 %v871_v34, %v103_v46  ;;  %v405_v59 = vadd.f32 %v373_v41, %v309_v49  ;;  %v389_v60 = vadd.f32 %v357_v42, %v293_v50  ;;  %v298_v44 = vld [vmem:[%s1024_s1 + $0x28] sm:$0xff]  ;;  %v348_v50 = vld [vmem:[#allocation6 + $0xb8] sm:$0xff] }
  0xae   :  { %v374_v53 = vmul.f32 %v342_v43, %v278_v47  ;;  %v358_v54 = vmul.f32 %v326_v45, %v262_v48  ;;  %v297_v43 = vld [vmem:[%s1024_s1 + $0x20] sm:$0xff]  ;;  %v347_v48 = vld [vmem:[#allocation6 + $0xb0] sm:$0xff] }
  0xaf   :  { %v188_v56 = vpop.permute.xlu0 %187  ;;  %v193_v58 = vpop.permute.xlu1 %192 }
  0xb0   :  { %v279_v61 = vmul.f32 %v871_v34, %v188_v56  ;;  %v280_v62 = vmul.f32 %v871_v34, %v193_v58  ;;  %v406_v63 = vadd.f32 %v374_v53, %v310_v51  ;;  %v390_v0 = vadd.f32 %v358_v54, %v294_v52  ;;  %v315_v56 = vld [vmem:[%s1024_s1 + $0xb0] sm:$0xff] }
  0xb2   :  { %v375_v3 = vmul.f32 %v343_v55, %v279_v61  ;;  %v376_v4 = vmul.f32 %v344_v57, %v280_v62  ;;  %v575_v5 = vpack.c.bf16 %v406_v63, %v405_v59  ;;  %v577_v6 = vpack.c.bf16 %v390_v0, %v389_v60  ;;  %v316_v57 = vld [vmem:[%s1024_s1 + $0xb8] sm:$0xff]  ;;  %v332_v63 = vld [vmem:[#allocation6 + $0x38] sm:$0xff] }
  0xb3   :  { %v108_v8 = vpop.permute.xlu0 %107  ;;  %v113_v10 = vpop.permute.xlu1 %112  ;;  %v331_v61 = vld [vmem:[#allocation6 + $0x30] sm:$0xff] }
  0xb4   :  { %v407_v11 = vadd.f32 %v375_v3, %v311_v1  ;;  %v408_v12 = vadd.f32 %v376_v4, %v312_v2  ;;  %v263_v13 = vmul.f32 %v871_v34, %v108_v8  ;;  %v264_v14 = vmul.f32 %v871_v34, %v113_v10  ;;  %576 = vmatprep.subr.bf16.mxu0 %v575_v5  ;;  %v299_v5 = vld [vmem:[%s1024_s1 + $0x30] sm:$0xff]  ;;  %v349_v10 = vld [vmem:[#allocation6 + $0xc0] sm:$0xff] }
  0xb5   :  { %578 = vmatpush3.bf16.xpose.msra.mxu0 %v577_v6  ;;  %v300_v6 = vld [vmem:[%s1024_s1 + $0x38] sm:$0xff] }
  0xb6   :  { %v359_v17 = vmul.f32 %v327_v7, %v263_v13  ;;  %v360_v18 = vmul.f32 %v328_v9, %v264_v14  ;;  %v579_v19 = vpack.c.bf16 %v408_v12, %v407_v11  ;;  %v350_v12 = vld [vmem:[#allocation6 + $0xc8] sm:$0xff] }
  0xb7   :  { %v198_v21 = vpop.permute.xlu0 %197  ;;  %v203_v23 = vpop.permute.xlu1 %202 }
  0xb8   :  { %v391_v24 = vadd.f32 %v359_v17, %v295_v15  ;;  %v392_v25 = vadd.f32 %v360_v18, %v296_v16  ;;  %v281_v26 = vmul.f32 %v871_v34, %v198_v21  ;;  %v282_v27 = vmul.f32 %v871_v34, %v203_v23  ;;  %580 = vmatprep.subr.bf16.mxu0 %v579_v19  ;;  %v317_v18 = vld [vmem:[%s1024_s1 + $0xc0] sm:$0xff]  ;;  %v318_v19 = vld [vmem:[%s1024_s1 + $0xc8] sm:$0xff] }
  0xb9   :  { %v333_v23 = vld [vmem:[#allocation6 + $0x40] sm:$0xff] }
  0xba   :  { %v377_v30 = vmul.f32 %v345_v20, %v281_v26  ;;  %v378_v31 = vmul.f32 %v346_v22, %v282_v27  ;;  %v581_v32 = vpack.c.bf16 %v392_v25, %v391_v24  ;;  %v334_v25 = vld [vmem:[#allocation6 + $0x48] sm:$0xff] }
  0xbb   :  { %v118_v36 = vpop.permute.xlu0 %117  ;;  %v123_v38 = vpop.permute.xlu1 %122 }
  0xbc   :  { %v409_v39 = vadd.f32 %v377_v30, %v313_v28  ;;  %v410_v40 = vadd.f32 %v378_v31, %v314_v29  ;;  %v265_v41 = vmul.f32 %v871_v34, %v118_v36  ;;  %v266_v42 = vmul.f32 %v871_v34, %v123_v38  ;;  %v301_v31 = vld [vmem:[%s1024_s1 + $0x40] sm:$0xff]  ;;  %v351_v38 = vld [vmem:[#allocation6 + $0xd0] sm:$0xff] }
  0xbd   :  { %582 = vmatpush3.bf16.xpose.msra.mxu0 %v581_v32  ;;  %v302_v32 = vld [vmem:[%s1024_s1 + $0x48] sm:$0xff] }
  0xbe   :  { %v361_v45 = vmul.f32 %v329_v35, %v265_v41  ;;  %v362_v46 = vmul.f32 %v330_v37, %v266_v42  ;;  %v583_v47 = vpack.c.bf16 %v410_v40, %v409_v39  ;;  %v352_v40 = vld [vmem:[#allocation6 + $0xd8] sm:$0xff] }
  0xbf   :  { %v208_v49 = vpop.permute.xlu0 %207  ;;  %v213_v51 = vpop.permute.xlu1 %212 }
  0xc0   :  { %v393_v52 = vadd.f32 %v361_v45, %v297_v43  ;;  %v394_v53 = vadd.f32 %v362_v46, %v298_v44  ;;  %v283_v54 = vmul.f32 %v871_v34, %v208_v49  ;;  %v284_v55 = vmul.f32 %v871_v34, %v213_v51  ;;  %584 = vmatprep.subr.bf16.mxu0 %v583_v47  ;;  %v319_v46 = vld [vmem:[%s1024_s1 + $0xd0] sm:$0xff]  ;;  %v320_v47 = vld [vmem:[%s1024_s1 + $0xd8] sm:$0xff] }
  0xc1   :  { %v335_v51 = vld [vmem:[#allocation6 + $0x50] sm:$0xff] }
  0xc2   :  { %v379_v58 = vmul.f32 %v347_v48, %v283_v54  ;;  %v380_v59 = vmul.f32 %v348_v50, %v284_v55  ;;  %v585_v60 = vpack.c.bf16 %v394_v53, %v393_v52  ;;  %v336_v53 = vld [vmem:[#allocation6 + $0x58] sm:$0xff] }
  0xc3   :  { %v128_v62 = vpop.permute.xlu0 %127  ;;  %v133_v0 = vpop.permute.xlu1 %132 }
  0xc4   :  { %v411_v1 = vadd.f32 %v379_v58, %v315_v56  ;;  %v412_v2 = vadd.f32 %v380_v59, %v316_v57  ;;  %v267_v3 = vmul.f32 %v871_v34, %v128_v62  ;;  %v268_v4 = vmul.f32 %v871_v34, %v133_v0  ;;  %v303_v59 = vld [vmem:[%s1024_s1 + $0x50] sm:$0xff]  ;;  %v353_v0 = vld [vmem:[#allocation6 + $0xe0] sm:$0xff] }
  0xc5   :  { %586 = vmatpush3.bf16.xpose.msra.mxu0 %v585_v60  ;;  %v304_v60 = vld [vmem:[%s1024_s1 + $0x58] sm:$0xff] }
  0xc6   :  { %v363_v7 = vmul.f32 %v331_v61, %v267_v3  ;;  %v364_v8 = vmul.f32 %v332_v63, %v268_v4  ;;  %v587_v9 = vpack.c.bf16 %v412_v2, %v411_v1  ;;  %v354_v2 = vld [vmem:[#allocation6 + $0xe8] sm:$0xff] }
  0xc7   :  { %v218_v11 = vpop.permute.xlu0 %217  ;;  %v223_v13 = vpop.permute.xlu1 %222 }
  0xc8   :  { %v395_v14 = vadd.f32 %v363_v7, %v299_v5  ;;  %v396_v15 = vadd.f32 %v364_v8, %v300_v6  ;;  %v285_v16 = vmul.f32 %v871_v34, %v218_v11  ;;  %v286_v17 = vmul.f32 %v871_v34, %v223_v13  ;;  %588 = vmatprep.subr.bf16.mxu0 %v587_v9  ;;  %v321_v8 = vld [vmem:[%s1024_s1 + $0xe0] sm:$0xff]  ;;  %v322_v9 = vld [vmem:[%s1024_s1 + $0xe8] sm:$0xff] }
  0xc9   :  { %v337_v13 = vld [vmem:[#allocation6 + $0x60] sm:$0xff] }
  0xca   :  { %v381_v20 = vmul.f32 %v349_v10, %v285_v16  ;;  %v382_v21 = vmul.f32 %v350_v12, %v286_v17  ;;  %v589_v22 = vpack.c.bf16 %v396_v15, %v395_v14  ;;  %v338_v15 = vld [vmem:[#allocation6 + $0x68] sm:$0xff] }
  0xcb   :  { %v138_v24 = vpop.permute.xlu0 %137  ;;  %v143_v26 = vpop.permute.xlu1 %142 }
  0xcc   :  { %v413_v27 = vadd.f32 %v381_v20, %v317_v18  ;;  %v414_v28 = vadd.f32 %v382_v21, %v318_v19  ;;  %v269_v29 = vmul.f32 %v871_v34, %v138_v24  ;;  %v270_v30 = vmul.f32 %v871_v34, %v143_v26  ;;  %v305_v21 = vld [vmem:[%s1024_s1 + $0x60] sm:$0xff]  ;;  %v355_v26 = vld [vmem:[#allocation6 + $0xf0] sm:$0xff] }
  0xcd   :  { %590 = vmatpush3.bf16.xpose.msra.mxu0 %v589_v22  ;;  %v306_v22 = vld [vmem:[%s1024_s1 + $0x68] sm:$0xff] }
  0xce   :  { %v365_v35 = vmul.f32 %v333_v23, %v269_v29  ;;  %v366_v36 = vmul.f32 %v334_v25, %v270_v30  ;;  %v591_v37 = vpack.c.bf16 %v414_v28, %v413_v27  ;;  %v356_v28 = vld [vmem:[#allocation6 + $0xf8] sm:$0xff] }
  0xcf   :  { %v228_v39 = vpop.permute.xlu0 %227  ;;  %v233_v41 = vpop.permute.xlu1 %232 }
  0xd0   :  { %v397_v42 = vadd.f32 %v365_v35, %v301_v31  ;;  %v398_v43 = vadd.f32 %v366_v36, %v302_v32  ;;  %v287_v44 = vmul.f32 %v871_v34, %v228_v39  ;;  %v288_v45 = vmul.f32 %v871_v34, %v233_v41  ;;  %592 = vmatprep.subr.bf16.mxu0 %v591_v37  ;;  %v323_v36 = vld [vmem:[%s1024_s1 + $0xf0] sm:$0xff]  ;;  %v324_v37 = vld [vmem:[%s1024_s1 + $0xf8] sm:$0xff] }
  0xd1   :  { %v339_v41 = vld [vmem:[#allocation6 + $0x70] sm:$0xff] }
  0xd2   :  { %v383_v48 = vmul.f32 %v351_v38, %v287_v44  ;;  %v384_v49 = vmul.f32 %v352_v40, %v288_v45  ;;  %v593_v50 = vpack.c.bf16 %v398_v43, %v397_v42  ;;  %v340_v43 = vld [vmem:[#allocation6 + $0x78] sm:$0xff] }
  0xd3   :  { %v148_v52 = vpop.permute.xlu0 %147  ;;  %v153_v54 = vpop.permute.xlu1 %152 }
  0xd4   :  { %v415_v55 = vadd.f32 %v383_v48, %v319_v46  ;;  %v416_v56 = vadd.f32 %v384_v49, %v320_v47  ;;  %v271_v57 = vmul.f32 %v871_v34, %v148_v52  ;;  %v272_v58 = vmul.f32 %v871_v34, %v153_v54  ;;  %v307_v49 = vld [vmem:[%s1024_s1 + $0x70] sm:$0xff] }
  0xd5   :  { %594 = vmatpush3.bf16.xpose.msra.mxu0 %v593_v50  ;;  %v308_v50 = vld [vmem:[%s1024_s1 + $0x78] sm:$0xff] }
  0xd6   :  { %v367_v61 = vmul.f32 %v335_v51, %v271_v57  ;;  %v368_v62 = vmul.f32 %v336_v53, %v272_v58  ;;  %v595_v63 = vpack.c.bf16 %v416_v56, %v415_v55  ;;  %v503_v57 = vld [vmem:[%s1029_s6] sm:$0x3]  ;;  %s659_s6 = scalar_lea.vmem %s531_s17, 256 }
  0xd7   :  { %v238_v1 = vpop.permute.xlu0 %237  ;;  %v243_v3 = vpop.permute.xlu1 %242  ;;  %v504_v58 = vld [vmem:[%s1030_s7] sm:$0x3]  ;;  %p660_p2 = scmp.ne.s32.totalorder %s531_s17, %s659_s6  ;;  %p665_p4 = scmp.lt.s32.totalorder %s659_s6, %s659_s6 }
  0xd8   :  { %v399_v4 = vadd.f32 %v367_v61, %v303_v59  ;;  %v400_v5 = vadd.f32 %v368_v62, %v304_v60  ;;  %v289_v6 = vmul.f32 %v871_v34, %v238_v1  ;;  %v290_v7 = vmul.f32 %v871_v34, %v243_v3  ;;  %596 = vmatprep.subr.bf16.mxu0 %v595_v63  ;;  %v502_v61 = vld [vmem:[%s1028_s5] sm:$0x3] }
  0xd9   :  { %v505_v59 = vmul.f32 %v504_v58, %v503_v57  ;;  %p666_p5 = por %p665_p4, %p664_p3 }
  0xda   :  { %v385_v10 = vmul.f32 %v353_v0, %v289_v6  ;;  %v386_v11 = vmul.f32 %v354_v2, %v290_v7  ;;  %v597_v12 = vpack.c.bf16 %v400_v5, %v399_v4 }
  0xdb   :  { %v158_v14 = vpop.permute.xlu0 %157  ;;  %v163_v16 = vpop.permute.xlu1 %162  ;;  %v506_v62 = vadd.f32 %v505_v59, %v502_v61  ;;  %p667_p6 = pnand %p666_p5, %p660_p2 }
  0xdc   :  { %v417_v17 = vadd.f32 %v385_v10, %v321_v8  ;;  %v418_v18 = vadd.f32 %v386_v11, %v322_v9  ;;  %v273_v19 = vmul.f32 %v871_v34, %v158_v14  ;;  %v274_v20 = vmul.f32 %v871_v34, %v163_v16 }
  0xdd   :  { %598 = vmatpush3.bf16.xpose.msra.mxu0 %v597_v12 }
  0xde   :  { %v369_v23 = vmul.f32 %v337_v13, %v273_v19  ;;  %v370_v24 = vmul.f32 %v338_v15, %v274_v20  ;;  %v599_v25 = vpack.c.bf16 %v418_v18, %v417_v17 }
  0xdf   :  { %v248_v27 = vpop.permute.xlu0 %247  ;;  %v253_v29 = vpop.permute.xlu1 %252 }
  0xe0   :  { %v401_v30 = vadd.f32 %v369_v23, %v305_v21  ;;  %v402_v31 = vadd.f32 %v370_v24, %v306_v22  ;;  %v291_v32 = vmul.f32 %v871_v34, %v248_v27  ;;  %v292_v35 = vmul.f32 %v871_v34, %v253_v29  ;;  %600 = vmatprep.subr.bf16.mxu0 %v599_v25 }
  0xe2   :  { %v387_v38 = vmul.f32 %v355_v26, %v291_v32  ;;  %v388_v39 = vmul.f32 %v356_v28, %v292_v35  ;;  %v601_v40 = vpack.c.bf16 %v402_v31, %v401_v30 }
  0xe3   :  { %v168_v42 = vpop.permute.xlu0 %167  ;;  %v173_v44 = vpop.permute.xlu1 %172 }
  0xe4   :  { %v419_v45 = vadd.f32 %v387_v38, %v323_v36  ;;  %v420_v46 = vadd.f32 %v388_v39, %v324_v37  ;;  %v275_v47 = vmul.f32 %v871_v34, %v168_v42  ;;  %v276_v48 = vmul.f32 %v871_v34, %v173_v44 }
  0xe5   :  { %602 = vmatpush3.bf16.xpose.msra.mxu0 %v601_v40  ;;  %v510_v34 = vlaneseq }
  0xe6   :  { %v371_v51 = vmul.f32 %v339_v41, %v275_v47  ;;  %v372_v52 = vmul.f32 %v340_v43, %v276_v48  ;;  %v603_v53 = vpack.c.bf16 %v420_v46, %v419_v45 }
  0xe7   :  { %v511_v60 = vshrl.u32 %v510_v34, 7 }
  0xe8   :  { %v403_v54 = vadd.f32 %v371_v51, %v307_v49  ;;  %v404_v55 = vadd.f32 %v372_v52, %v308_v50  ;;  %604 = vmatprep.subr.bf16.mxu0 %v603_v53 }
  0xe9   :  { %v512_v63 = vsub.s32 0, %v511_v60  ;;  %v516_v0 = vsub.s32 1, %v511_v60 }
  0xea   :  { %v605_v56 = vpack.c.bf16 %v404_v55, %v403_v54 }
  0xeb   :  { %v513_v1 = vrot.slane %v506_v62, %v512_v63 }
  0xed   :  { %606 = vmatpush3.bf16.xpose.msra.mxu0 %v605_v56 }
  0xf4   :  { %574 = vmatmul.mubr.f32.vlgmr.msra.gmra.mrb[0].mxu0 %v865_v33  ;;  %v517_v33 = vrot.slane %v506_v62, %v516_v0 }
 0x1c7   :  { %v490_v2 = vpop.f32.mrb[0].mxu0 }
 0x1c8   :  { %v520_v3 = vadd.f32 %v513_v1, %v490_v2  ;;  %v492_v4 = vpop.f32.mrb[1].mxu0 }
 0x1c9   :  { %v521_v5 = vadd.f32 %v517_v33, %v492_v4 }
 0x1ca   :  { %522 = vst [vmem:[#allocation8] sm:$0xff] %v520_v3 }
 0x1cb   :  { %523 = vst [vmem:[#allocation8 + $0x8] sm:$0xff] %v521_v5 }
 0x1cc   :  { %670 = shalt.err (!%p667_p6)
}
 0x1cd   :  { %s671_s18 = scalar_lea.hbm %s1031_s8, 256 }
 0x1ce   :  { %p672_p7 = scmp.ne.s32.totalorder %s1031_s8, %s671_s18  ;;  %p675_p8 = scmp.lt.u32.totalorder %s671_s18, %s1031_s8 }
 0x1d0   :  { %p677_p9 = pnand %p675_p8, %p672_p7 }
 0x1d2   :  { %680 = shalt.err (!%p677_p9)
}
 0x1d3   :  { %533 = dma.vmem_to_hbm [thread:$0]  %s531_s17, 256, %s1031_s8, [#allocation5]  }
 0x1d4   :  { %685 = dma.done.wait [#allocation5], 256  }
 0x1d5   :  { %686 = vsyncadd [#allocation5], 4294967040 }
 0x1d6   :  { %537 = vsyncpa [#allocation4], 1 }
 0x1d7   :  { %538 = vsyncpa [#allocation7], 1 }
 0x1d8   :  { %539 = vsyncpa [#allocation5], 1 }

</bundles_post_ra>
